<compile_context>
chip_gen: v5e
topology: v5e:2x2
jax: 0.10.0
libtpu: 0.0.40
codegen_flags: <defaults>
</compile_context>

<pallas_src>
import math
from functools import partial

import jax
import jax.numpy as jnp
from jax import lax
from jax.experimental import pallas as pl
from jax.experimental.pallas import tpu as pltpu

_NEG = -1e30  # masked logit; exp underflows to exactly 0 in f32


# ----------------------------------------------------------------------------
# Pallas kernel: one (batch, iteration, pixel-tile) grid step.
# ----------------------------------------------------------------------------
def _ssn_kernel(pix_ref, cent0_ref, iy_ref, ix_ref, sy_ref, sx_ref,
                aff_ref, cent_ref, lab_ref, cent_aug_s, num_s, *, c_feat):
    it = pl.program_id(1)
    pt = pl.program_id(2)
    n_it = pl.num_programs(1)
    n_pt = pl.num_programs(2)

    # ---- state init ---------------------------------------------------------
    @pl.when(jnp.logical_and(it == 0, pt == 0))
    def _():
        cent_aug_s[...] = cent0_ref[0]          # (Cp, S) augmented init centroids

    @pl.when(pt == 0)
    def _():
        num_s[...] = jnp.zeros_like(num_s)      # zero the num/den accumulator

    pix = pix_ref[0]                            # (Cp, TP): features, ones row at c_feat, zero pad
    cent_aug = cent_aug_s[...]                  # (Cp, S):  2*c rows, -||c||^2 at c_feat, zero pad

    # ---- affinities of this pixel tile --------------------------------------
    # logits[s,p] = 2*c_s.p_p - ||c_s||^2   (2x scale + norm folded into cent_aug)
    scores = lax.dot_general(cent_aug, pix, (((0,), (0,)), ((), ())),
                             preferred_element_type=jnp.float32)          # (S, TP)

    # 3x3-neighbourhood mask rebuilt from grid coordinates
    dy = sy_ref[...] - iy_ref[...]                                        # (S, TP)
    dx = sx_ref[...] - ix_ref[...]
    near = jnp.maximum(jnp.abs(dy), jnp.abs(dx)) <= 1.0
    logits = jnp.where(near, scores, _NEG)

    m = jnp.max(logits, axis=0, keepdims=True)                            # (1, TP)
    e = jnp.exp(logits - m)                                               # masked -> exactly 0
    z = jnp.sum(e, axis=0, keepdims=True)                                 # (1, TP)
    aff = e * (1.0 / z)                                                   # (S, TP)

    # ---- centroid numerator/denominator accumulation over pixel tiles -------
    # Row c_feat of pix is ones, so that row of the product is sum_p aff[s,p].
    num_s[...] += lax.dot_general(pix, aff, (((1,), (1,)), ((), ())),
                                  preferred_element_type=jnp.float32)     # (Cp, S)

    # ---- big outputs: only on the last iteration (no redundant HBM writes) --
    @pl.when(it == n_it - 1)
    def _():
        aff_ref[0] = aff
        nsp = aff.shape[0]
        sidx = lax.broadcasted_iota(jnp.int32, aff.shape, 0)
        best = jnp.max(aff, axis=0, keepdims=True)
        lab_ref[0] = jnp.min(jnp.where(aff == best, sidx, nsp),
                             axis=0, keepdims=True)                       # (1, TP) int32

    # ---- finalize centroids after the last pixel tile ------------------------
    @pl.when(pt == n_pt - 1)
    def _():
        acc = num_s[...]                                                  # (Cp, S)
        rows = lax.broadcasted_iota(jnp.int32, acc.shape, 0)
        is_den = rows == c_feat
        den = jnp.sum(jnp.where(is_den, acc, 0.0), axis=0, keepdims=True) + 1e-16
        cent_full = acc * (1.0 / den)                                     # feature rows: new centroids
        cent_ref[0] = cent_full                                           # wrapper slices [:C]
        cent_c = jnp.where(is_den, 0.0, cent_full)                        # zero the aux row (pads already 0)
        cent_sq = jnp.sum(cent_c * cent_c, axis=0, keepdims=True)         # (1, S)
        cent_aug_s[...] = jnp.where(is_den, -cent_sq, 2.0 * cent_c)       # re-augment for next iter


# ----------------------------------------------------------------------------
# Tile / VMEM budget selection (per TPU generation)
# ----------------------------------------------------------------------------
def _vmem_budgets():
    cap = 64 * 1024 * 1024                       # conservative default (v7x per-core VMEM)
    try:
        info = pltpu.get_tpu_info()
        cap = int(getattr(info, "vmem_capacity_bytes", cap))
    except Exception:
        pass
    cap = min(max(cap, 64 * 1024 * 1024), 128 * 1024 * 1024)
    tile_budget = (3 * cap) // 8                 # 48 MiB on 128 MiB parts, 24 MiB on v7x
    vmem_limit = (3 * cap) // 4                  # 96 MiB / 48 MiB
    return tile_budget, vmem_limit


def _choose_tile_p(P, S, Cp, tile_budget):
    """Pick the pixel tile TP (multiple of 128) and the padded pixel count."""
    # double-buffered pipeline blocks (aff, pix, iy, ix, labels) + ~4 (S,TP) f32 temporaries
    per_pixel = 4 * (2 * S + 2 * Cp + 6) + 16 * S
    tp_max = max(128, (tile_budget // per_pixel) // 128 * 128)
    p_aligned = -(-P // 128) * 128
    if p_aligned <= tp_max:
        return p_aligned, p_aligned              # whole image in one resident tile
    tp = tp_max
    p_pad = -(-P // tp) * tp
    return tp, p_pad


def _ssn_pallas(pix_aug, cent0_aug, iy, ix, sy, sx, n_iter, c_feat, tp, vmem_limit):
    B, Cp, P_pad = pix_aug.shape
    S = cent0_aug.shape[-1]
    n_pt = P_pad // tp
    last = n_iter - 1

    # Block index constant (resident) for it < last -> no intermediate HBM writeback;
    # only the final iteration streams the big outputs.
    def big_out_idx(b, it, pt):
        return (b, 0, jnp.where(it == last, pt, 0))

    aff, cent_out, labels = pl.pallas_call(
        partial(_ssn_kernel, c_feat=c_feat),
        out_shape=(
            jax.ShapeDtypeStruct((B, S, P_pad), jnp.float32),     # abs_affinity
            jax.ShapeDtypeStruct((B, Cp, S), jnp.float32),        # centroids (padded rows)
            jax.ShapeDtypeStruct((B, 1, P_pad), jnp.int32),       # hard labels
        ),
        grid_spec=pltpu.PrefetchScalarGridSpec(
            num_scalar_prefetch=0,
            grid=(B, n_iter, n_pt),
            in_specs=[
                pl.BlockSpec((1, Cp, tp), lambda b, it, pt: (b, 0, pt)),   # pixel features (+ones row)
                pl.BlockSpec((1, Cp, S), lambda b, it, pt: (b, 0, 0)),     # init augmented centroids
                pl.BlockSpec((1, tp), lambda b, it, pt: (0, pt)),          # per-pixel init-spix row
                pl.BlockSpec((1, tp), lambda b, it, pt: (0, pt)),          # per-pixel init-spix col
                pl.BlockSpec((S, 1), lambda b, it, pt: (0, 0)),            # per-superpixel row
                pl.BlockSpec((S, 1), lambda b, it, pt: (0, 0)),            # per-superpixel col
            ],
            out_specs=[
                pl.BlockSpec((1, S, tp), big_out_idx),
                pl.BlockSpec((1, Cp, S), lambda b, it, pt: (b, 0, 0)),
                pl.BlockSpec((1, 1, tp), big_out_idx),
            ],
            scratch_shapes=[
                pltpu.VMEM((Cp, S), jnp.float32),   # current augmented centroids
                pltpu.VMEM((Cp, S), jnp.float32),   # numerator/denominator accumulator
            ],
        ),
        compiler_params=pltpu.CompilerParams(
            dimension_semantics=("parallel", "arbitrary", "arbitrary"),
            vmem_limit_bytes=int(vmem_limit),
        ),
    )(pix_aug, cent0_aug, iy, ix, sy, sx)
    return aff, cent_out, labels


# ----------------------------------------------------------------------------
# Plain-JAX glue (matches the @torch.no_grad helpers in the SSN reference)
# ----------------------------------------------------------------------------
def ssn_iter(x, n_spix, n_iter):
    """x: (B, C, H, W).  Returns (abs_affinity, hard_labels, spixel_features)."""
    x = x.astype(jnp.float32)
    B, C, H, W = x.shape
    nsw = int(math.sqrt(n_spix * W / H))
    nsh = int(math.sqrt(n_spix * H / W))
    S = nsw * nsh
    assert H % nsh == 0 and W % nsw == 0, "use spatial sizes divisible by the superpixel grid"
    bh, bw = H // nsh, W // nsw
    P = H * W

    Cp = max(8, -(-(C + 1) // 8) * 8)            # channel axis padded to a sublane multiple
    tile_budget, vmem_limit = _vmem_budgets()
    tp, P_pad = _choose_tile_p(P, S, Cp, tile_budget)

    # initial centroids: adaptive_avg_pool2d == block mean in the divisible case
    cent0 = x.reshape(B, C, nsh, bh, nsw, bw).mean(axis=(3, 5)).reshape(B, C, S)

    # pixel features: channels on sublanes, pixels on lanes; ones row at index C;
    # zero pad rows and zero pad pixel columns (pad pixels contribute nothing).
    pix = x.reshape(B, C, P)
    pix_aug = jnp.zeros((B, Cp, P_pad), jnp.float32)
    pix_aug = pix_aug.at[:, :C, :P].set(pix)
    pix_aug = pix_aug.at[:, C, :P].set(1.0)

    # augmented centroids: feature rows scaled by 2, row C = -||c||^2 (folds scale + norm)
    cent0_aug = jnp.zeros((B, Cp, S), jnp.float32)
    cent0_aug = cent0_aug.at[:, :C, :].set(2.0 * cent0)
    cent0_aug = cent0_aug.at[:, C, :].set(-jnp.sum(cent0 * cent0, axis=1))

    # per-pixel initial superpixel grid coordinates (nearest-upsampled init labels)
    p_idx = jnp.arange(P_pad, dtype=jnp.int32)
    py, px = jnp.divmod(jnp.minimum(p_idx, P - 1), W)
    iy = (py // bh).astype(jnp.float32)[None, :]    # (1, P_pad)
    ix = (px // bw).astype(jnp.float32)[None, :]    # (1, P_pad)
    sy_i, sx_i = jnp.divmod(jnp.arange(S, dtype=jnp.int32), nsw)
    sy = sy_i.astype(jnp.float32)[:, None]          # (S, 1)
    sx = sx_i.astype(jnp.float32)[:, None]          # (S, 1)

    aff, cent_out, labels = _ssn_pallas(pix_aug, cent0_aug, iy, ix, sy, sx,
                                        n_iter, C, tp, vmem_limit)

    abs_affinity = aff[:, :, :P]                    # (B, S, P)
    spixel_features = cent_out[:, :C, :]            # (B, C, S)
    hard_labels = labels[:, 0, :P]                  # (B, P) int32 (reference returns int64)
    return abs_affinity, hard_labels, spixel_features


class SSNModel:
    def __init__(self, n_spix, training, n_iter=10):
        self.n_spix = n_spix
        self.n_iter = n_iter
        self.training = training

    def __call__(self, x):
        if self.training:
            return ssn_iter(x, self.n_spix, self.n_iter)
        else:
            # TODO(synk): sparse_ssn_iter uses sparse COO matmuls; dense kernel used instead.
            ssn_iter(x, self.n_spix, self.n_iter)  # original module returns None in eval mode
            return None


# ----------------------------------------------------------------------------
# Pure-JAX reference (dense equivalent of the PyTorch ssn_iter) for validation
# ----------------------------------------------------------------------------
def _ssn_reference(x, n_spix, n_iter):
    x = x.astype(jnp.float32)
    B, C, H, W = x.shape
    nsw = int(math.sqrt(n_spix * W / H))
    nsh = int(math.sqrt(n_spix * H / W))
    S = nsw * nsh
    bh, bw = H // nsh, W // nsw
    P = H * W
    cent = x.reshape(B, C, nsh, bh, nsw, bw).mean(axis=(3, 5)).reshape(B, C, S)
    pix = x.reshape(B, C, P)
    py, px = jnp.divmod(jnp.arange(P), W)
    iy, ix = py // bh, px // bw
    sy, sx = jnp.divmod(jnp.arange(S), nsw)
    near = ((jnp.abs(sy[:, None] - iy[None, :]) <= 1) &
            (jnp.abs(sx[:, None] - ix[None, :]) <= 1))              # (S, P)
    aff = None
    for _ in range(n_iter):
        d = (jnp.sum(pix * pix, axis=1)[:, None, :]
             - 2.0 * jnp.einsum("bcs,bcp->bsp", cent, pix)
             + jnp.sum(cent * cent, axis=1)[:, :, None])            # (B, S, P)
        logits = jnp.where(near[None], -d, -jnp.inf)
        aff = jax.nn.softmax(logits, axis=1)
        den = jnp.sum(aff, axis=2, keepdims=True) + 1e-16           # (B, S, 1)
        cent = jnp.einsum("bsp,bcp->bcs", aff, pix) / jnp.swapaxes(den, 1, 2)
    labels = jnp.argmax(aff, axis=1)
    return aff, labels, cent


if __name__ == "__main__":
    key = jax.random.PRNGKey(0)
    B, C, H, W = 2, 4, 16, 16
    n_spix = 16          # -> 4x4 superpixel grid over a 16x16 image
    n_iter = 10

    x = jax.random.normal(key, (B, C, H, W), dtype=jnp.float32)

    model = SSNModel(n_spix=n_spix, training=True, n_iter=n_iter)
    abs_affinity, hard_labels, spixel_features = model(x)
    jax.block_until_ready((abs_affinity, hard_labels, spixel_features))

    assert abs_affinity.shape == (B, n_spix, H * W)
    assert hard_labels.shape == (B, H * W)
    assert spixel_features.shape == (B, C, n_spix)
    # each pixel's affinity column must sum to 1 (softmax over its 3x3 candidates)
    assert bool(jnp.allclose(jnp.sum(abs_affinity, axis=1), 1.0, atol=1e-4))

    # compare against the pure-JAX dense reference
    ref_aff, ref_lab, ref_cent = _ssn_reference(x, n_spix, n_iter)
    assert bool(jnp.allclose(abs_affinity, ref_aff, atol=1e-4))
    assert bool(jnp.all(hard_labels == ref_lab))
    assert bool(jnp.allclose(spixel_features, ref_cent, atol=1e-3))

    print("KERNEL_OK")
</pallas_src>

<mosaic_0001>
module attributes {stable_mosaic.version = 11 : i64} {
  func.func @_ssn_kernel(%arg0: i32, %arg1: i32, %arg2: i32, %arg3: memref<1x8x256xf32, #tpu.memory_space<vmem>>, %arg4: memref<1x8x16xf32, #tpu.memory_space<vmem>>, %arg5: memref<1x256xf32, #tpu.memory_space<vmem>>, %arg6: memref<1x256xf32, #tpu.memory_space<vmem>>, %arg7: memref<16x1xf32, #tpu.memory_space<vmem>>, %arg8: memref<16x1xf32, #tpu.memory_space<vmem>>, %arg9: memref<1x16x256xf32, #tpu.memory_space<vmem>>, %arg10: memref<1x8x16xf32, #tpu.memory_space<vmem>>, %arg11: memref<1x1x256xi32, #tpu.memory_space<vmem>>, %arg12: memref<8x16xf32, #tpu.memory_space<vmem>>, %arg13: memref<8x16xf32, #tpu.memory_space<vmem>>) attributes {dimension_semantics = [#tpu.dimension_semantics<parallel>, #tpu.dimension_semantics<arbitrary>, #tpu.dimension_semantics<arbitrary>], iteration_bounds = array<i64: 2, 10, 1>, scalar_prefetch = 0 : i64, scratch_operands = 2 : i64, tpu.core_type = #tpu.core_type<tc>, window_params = [{transform_indices = @transform_0, window_bounds = array<i64: 1, 8, 256>}, {transform_indices = @transform_1, window_bounds = array<i64: 1, 8, 16>}, {transform_indices = @transform_2, window_bounds = array<i64: 1, 256>}, {transform_indices = @transform_3, window_bounds = array<i64: 1, 256>}, {pipeline_mode = #tpu.pipeline_mode<synchronous>, transform_indices = @transform_4, window_bounds = array<i64: 16, 1>}, {pipeline_mode = #tpu.pipeline_mode<synchronous>, transform_indices = @transform_5, window_bounds = array<i64: 16, 1>}, {transform_indices = @transform_6, window_bounds = array<i64: 1, 16, 256>}, {transform_indices = @transform_7, window_bounds = array<i64: 1, 8, 16>}, {transform_indices = @transform_8, window_bounds = array<i64: 1, 1, 256>}]} {
    %c0_i32 = arith.constant 0 : i32
    %0 = arith.cmpi eq, %arg1, %c0_i32 : i32
    %c0_i32_0 = arith.constant 0 : i32
    %1 = arith.cmpi eq, %arg2, %c0_i32_0 : i32
    %2 = arith.andi %0, %1 : i1
    %3 = arith.extui %2 : i1 to i32
    %c0_i32_1 = arith.constant 0 : i32
    %4 = arith.cmpi ne, %3, %c0_i32_1 : i32
    scf.if %4 {
      %c0_29 = arith.constant 0 : index
      %c0_30 = arith.constant 0 : index
      %c0_31 = arith.constant 0 : index
      %50 = vector.load %arg4[%c0_29, %c0_30, %c0_31] : memref<1x8x16xf32, #tpu.memory_space<vmem>>, vector<1x8x16xf32>
      %51 = vector.shape_cast %50 : vector<1x8x16xf32> to vector<8x16xf32>
      %c0_32 = arith.constant 0 : index
      %c0_33 = arith.constant 0 : index
      %52 = vector.load %arg12[%c0_32, %c0_33] : memref<8x16xf32, #tpu.memory_space<vmem>>, vector<8x16xf32>
      tpu.vector_store %arg12[%c0_32, %c0_33], %51 {strides = array<i32>} : memref<8x16xf32, #tpu.memory_space<vmem>>, vector<8x16xf32>,
    } else {
    }
    %c0_i32_2 = arith.constant 0 : i32
    %5 = arith.cmpi eq, %arg2, %c0_i32_2 : i32
    %6 = arith.extui %5 : i1 to i32
    %c0_i32_3 = arith.constant 0 : i32
    %7 = arith.cmpi ne, %6, %c0_i32_3 : i32
    scf.if %7 {
      %cst_29 = arith.constant 0.000000e+00 : f32
      %50 = vector.broadcast %cst_29 : f32 to vector<8x16xf32>
      %c0_30 = arith.constant 0 : index
      %c0_31 = arith.constant 0 : index
      %51 = vector.load %arg13[%c0_30, %c0_31] : memref<8x16xf32, #tpu.memory_space<vmem>>, vector<8x16xf32>
      tpu.vector_store %arg13[%c0_30, %c0_31], %50 {strides = array<i32>} : memref<8x16xf32, #tpu.memory_space<vmem>>, vector<8x16xf32>,
    } else {
    }
    %c0 = arith.constant 0 : index
    %c0_4 = arith.constant 0 : index
    %c0_5 = arith.constant 0 : index
    %8 = vector.load %arg3[%c0, %c0_4, %c0_5] : memref<1x8x256xf32, #tpu.memory_space<vmem>>, vector<1x8x256xf32>
    %9 = vector.shape_cast %8 : vector<1x8x256xf32> to vector<8x256xf32>
    %c0_6 = arith.constant 0 : index
    %c0_7 = arith.constant 0 : index
    %10 = vector.load %arg12[%c0_6, %c0_7] : memref<8x16xf32, #tpu.memory_space<vmem>>, vector<8x16xf32>
    %cst = arith.constant dense<0.000000e+00> : vector<16x256xf32>
    %11 = tpu.matmul %10, %9, %cst {dimension_numbers = #tpu.dot_dimension_numbers<[0], [0], [1], [1], [0, 1, 1, 1], [], []>} : vector<8x16xf32>, vector<8x256xf32>, vector<16x256xf32> -> vector<16x256xf32>
    %c0_8 = arith.constant 0 : index
    %c0_9 = arith.constant 0 : index
    %12 = vector.load %arg7[%c0_8, %c0_9] : memref<16x1xf32, #tpu.memory_space<vmem>>, vector<16x1xf32>
    %c0_10 = arith.constant 0 : index
    %c0_11 = arith.constant 0 : index
    %13 = vector.load %arg5[%c0_10, %c0_11] : memref<1x256xf32, #tpu.memory_space<vmem>>, vector<1x256xf32>
    %14 = vector.broadcast %12 : vector<16x1xf32> to vector<16x256xf32>
    %15 = vector.broadcast %13 : vector<1x256xf32> to vector<16x256xf32>
    %16 = arith.subf %14, %15 : vector<16x256xf32>
    %c0_12 = arith.constant 0 : index
    %c0_13 = arith.constant 0 : index
    %17 = vector.load %arg8[%c0_12, %c0_13] : memref<16x1xf32, #tpu.memory_space<vmem>>, vector<16x1xf32>
    %c0_14 = arith.constant 0 : index
    %c0_15 = arith.constant 0 : index
    %18 = vector.load %arg6[%c0_14, %c0_15] : memref<1x256xf32, #tpu.memory_space<vmem>>, vector<1x256xf32>
    %19 = vector.broadcast %17 : vector<16x1xf32> to vector<16x256xf32>
    %20 = vector.broadcast %18 : vector<1x256xf32> to vector<16x256xf32>
    %21 = arith.subf %19, %20 : vector<16x256xf32>
    %22 = math.absf %16 : vector<16x256xf32>
    %23 = math.absf %21 : vector<16x256xf32>
    %24 = arith.maximumf %22, %23 : vector<16x256xf32>
    %cst_16 = arith.constant 1.000000e+00 : f32
    %25 = vector.broadcast %cst_16 : f32 to vector<16x256xf32>
    %26 = arith.cmpf ole, %24, %25 : vector<16x256xf32>
    %cst_17 = arith.constant -1.000000e+30 : f32
    %27 = vector.broadcast %cst_17 : f32 to vector<16x256xf32>
    %28 = arith.select %26, %11, %27 : vector<16x256xi1>, vector<16x256xf32>
    %cst_18 = arith.constant dense<0xFF800000> : vector<256xf32>
    %29 = vector.multi_reduction <maximumf>, %28, %cst_18 [0] : vector<16x256xf32> to vector<256xf32>
    %30 = vector.shape_cast %29 : vector<256xf32> to vector<1x256xf32>
    %31 = vector.broadcast %30 : vector<1x256xf32> to vector<16x256xf32>
    %32 = arith.subf %28, %31 : vector<16x256xf32>
    %33 = math.exp %32 : vector<16x256xf32>
    %cst_19 = arith.constant dense<0.000000e+00> : vector<256xf32>
    %34 = vector.multi_reduction <add>, %33, %cst_19 [0] : vector<16x256xf32> to vector<256xf32>
    %35 = vector.shape_cast %34 : vector<256xf32> to vector<1x256xf32>
    %cst_20 = arith.constant 1.000000e+00 : f32
    %36 = vector.broadcast %cst_20 : f32 to vector<1x256xf32>
    %37 = arith.divf %36, %35 : vector<1x256xf32>
    %38 = vector.broadcast %37 : vector<1x256xf32> to vector<16x256xf32>
    %39 = arith.mulf %33, %38 : vector<16x256xf32>
    %c0_21 = arith.constant 0 : index
    %c0_22 = arith.constant 0 : index
    %40 = vector.load %arg13[%c0_21, %c0_22] : memref<8x16xf32, #tpu.memory_space<vmem>>, vector<8x16xf32>
    %cst_23 = arith.constant dense<0.000000e+00> : vector<8x16xf32>
    %41 = tpu.matmul %9, %39, %cst_23 {dimension_numbers = #tpu.dot_dimension_numbers<[1], [1], [0], [0], [0, 0, 1, 0], [], []>} : vector<8x256xf32>, vector<16x256xf32>, vector<8x16xf32> -> vector<8x16xf32>
    %42 = arith.addf %40, %41 : vector<8x16xf32>
    %c0_24 = arith.constant 0 : index
    %c0_25 = arith.constant 0 : index
    %43 = vector.load %arg13[%c0_24, %c0_25] : memref<8x16xf32, #tpu.memory_space<vmem>>, vector<8x16xf32>
    tpu.vector_store %arg13[%c0_24, %c0_25], %42 {strides = array<i32>} : memref<8x16xf32, #tpu.memory_space<vmem>>, vector<8x16xf32>,
    %c9_i32 = arith.constant 9 : i32
    %44 = arith.cmpi eq, %arg1, %c9_i32 : i32
    %45 = arith.extui %44 : i1 to i32
    %c0_i32_26 = arith.constant 0 : i32
    %46 = arith.cmpi ne, %45, %c0_i32_26 : i32
    scf.if %46 {
      %c0_29 = arith.constant 0 : index
      %c0_30 = arith.constant 0 : index
      %c0_31 = arith.constant 0 : index
      %50 = vector.load %arg9[%c0_29, %c0_30, %c0_31] : memref<1x16x256xf32, #tpu.memory_space<vmem>>, vector<1x16x256xf32>
      %51 = vector.shape_cast %50 : vector<1x16x256xf32> to vector<16x256xf32>
      %52 = vector.shape_cast %39 : vector<16x256xf32> to vector<1x16x256xf32>
      tpu.vector_store %arg9[%c0_29, %c0_30, %c0_31], %52 {strides = array<i32>} : memref<1x16x256xf32, #tpu.memory_space<vmem>>, vector<1x16x256xf32>,
      %53 = tpu.iota {dimensions = array<i32: 0>} : vector<16x256xi32>
      %cst_32 = arith.constant dense<0xFF800000> : vector<256xf32>
      %54 = vector.multi_reduction <maximumf>, %39, %cst_32 [0] : vector<16x256xf32> to vector<256xf32>
      %55 = vector.shape_cast %54 : vector<256xf32> to vector<1x256xf32>
      %56 = vector.broadcast %55 : vector<1x256xf32> to vector<16x256xf32>
      %57 = arith.cmpf oeq, %39, %56 : vector<16x256xf32>
      %c16_i32 = arith.constant 16 : i32
      %58 = vector.broadcast %c16_i32 : i32 to vector<16x256xi32>
      %59 = arith.select %57, %53, %58 : vector<16x256xi1>, vector<16x256xi32>
      %cst_33 = arith.constant dense<2147483647> : vector<256xi32>
      %60 = vector.multi_reduction <minsi>, %59, %cst_33 [0] : vector<16x256xi32> to vector<256xi32>
      %61 = vector.shape_cast %60 : vector<256xi32> to vector<1x256xi32>
      %c0_34 = arith.constant 0 : index
      %c0_35 = arith.constant 0 : index
      %c0_36 = arith.constant 0 : index
      %62 = vector.load %arg11[%c0_34, %c0_35, %c0_36] : memref<1x1x256xi32, #tpu.memory_space<vmem>>, vector<1x1x256xi32>
      %63 = vector.shape_cast %62 : vector<1x1x256xi32> to vector<1x256xi32>
      %64 = vector.shape_cast %61 : vector<1x256xi32> to vector<1x1x256xi32>
      tpu.vector_store %arg11[%c0_34, %c0_35, %c0_36], %64 {strides = array<i32>} : memref<1x1x256xi32, #tpu.memory_space<vmem>>, vector<1x1x256xi32>,
    } else {
    }
    %c0_i32_27 = arith.constant 0 : i32
    %47 = arith.cmpi eq, %arg2, %c0_i32_27 : i32
    %48 = arith.extui %47 : i1 to i32
    %c0_i32_28 = arith.constant 0 : i32
    %49 = arith.cmpi ne, %48, %c0_i32_28 : i32
    scf.if %49 {
      %c0_29 = arith.constant 0 : index
      %c0_30 = arith.constant 0 : index
      %50 = vector.load %arg13[%c0_29, %c0_30] : memref<8x16xf32, #tpu.memory_space<vmem>>, vector<8x16xf32>
      %51 = tpu.iota {dimensions = array<i32: 0>} : vector<8x16xi32>
      %c4_i32 = arith.constant 4 : i32
      %52 = vector.broadcast %c4_i32 : i32 to vector<8x16xi32>
      %53 = arith.cmpi eq, %51, %52 : vector<8x16xi32>
      %cst_31 = arith.constant 0.000000e+00 : f32
      %54 = vector.broadcast %cst_31 : f32 to vector<8x16xf32>
      %55 = arith.select %53, %50, %54 : vector<8x16xi1>, vector<8x16xf32>
      %cst_32 = arith.constant dense<0.000000e+00> : vector<16xf32>
      %56 = vector.multi_reduction <add>, %55, %cst_32 [0] : vector<8x16xf32> to vector<16xf32>
      %57 = vector.shape_cast %56 : vector<16xf32> to vector<1x16xf32>
      %cst_33 = arith.constant 1.000000e-16 : f32
      %58 = vector.broadcast %cst_33 : f32 to vector<1x16xf32>
      %59 = arith.addf %57, %58 : vector<1x16xf32>
      %cst_34 = arith.constant 1.000000e+00 : f32
      %60 = vector.broadcast %cst_34 : f32 to vector<1x16xf32>
      %61 = arith.divf %60, %59 : vector<1x16xf32>
      %62 = vector.broadcast %61 : vector<1x16xf32> to vector<8x16xf32>
      %63 = arith.mulf %50, %62 : vector<8x16xf32>
      %c0_35 = arith.constant 0 : index
      %c0_36 = arith.constant 0 : index
      %c0_37 = arith.constant 0 : index
      %64 = vector.load %arg10[%c0_35, %c0_36, %c0_37] : memref<1x8x16xf32, #tpu.memory_space<vmem>>, vector<1x8x16xf32>
      %65 = vector.shape_cast %64 : vector<1x8x16xf32> to vector<8x16xf32>
      %66 = vector.shape_cast %63 : vector<8x16xf32> to vector<1x8x16xf32>
      tpu.vector_store %arg10[%c0_35, %c0_36, %c0_37], %66 {strides = array<i32>} : memref<1x8x16xf32, #tpu.memory_space<vmem>>, vector<1x8x16xf32>,
      %cst_38 = arith.constant 0.000000e+00 : f32
      %67 = vector.broadcast %cst_38 : f32 to vector<8x16xf32>
      %68 = arith.select %53, %67, %63 : vector<8x16xi1>, vector<8x16xf32>
      %69 = arith.mulf %68, %68 : vector<8x16xf32>
      %cst_39 = arith.constant dense<0.000000e+00> : vector<16xf32>
      %70 = vector.multi_reduction <add>, %69, %cst_39 [0] : vector<8x16xf32> to vector<16xf32>
      %71 = vector.shape_cast %70 : vector<16xf32> to vector<1x16xf32>
      %cst_40 = arith.constant 0.000000e+00 : f32
      %72 = vector.broadcast %cst_40 : f32 to vector<1x16xf32>
      %73 = arith.subf %72, %71 : vector<1x16xf32>
      %cst_41 = arith.constant 2.000000e+00 : f32
      %74 = vector.broadcast %cst_41 : f32 to vector<8x16xf32>
      %75 = arith.mulf %74, %68 : vector<8x16xf32>
      %76 = vector.shape_cast %73 : vector<1x16xf32> to vector<1x16xf32>
      %77 = vector.broadcast %76 : vector<1x16xf32> to vector<8x16xf32>
      %78 = arith.select %53, %77, %75 : vector<8x16xi1>, vector<8x16xf32>
      %c0_42 = arith.constant 0 : index
      %c0_43 = arith.constant 0 : index
      %79 = vector.load %arg12[%c0_42, %c0_43] : memref<8x16xf32, #tpu.memory_space<vmem>>, vector<8x16xf32>
      tpu.vector_store %arg12[%c0_42, %c0_43], %78 {strides = array<i32>} : memref<8x16xf32, #tpu.memory_space<vmem>>, vector<8x16xf32>,
    } else {
    }
    return
  }
  func.func @transform_0(%arg0: i32, %arg1: i32, %arg2: i32) -> (i32, i32, i32) {
    %c0_i32 = arith.constant 0 : i32
    %c0_i32_0 = arith.constant 0 : i32
    return %arg0, %c0_i32, %arg2 : i32, i32, i32
  }
  func.func @transform_1(%arg0: i32, %arg1: i32, %arg2: i32) -> (i32, i32, i32) {
    %c0_i32 = arith.constant 0 : i32
    %c0_i32_0 = arith.constant 0 : i32
    %c0_i32_1 = arith.constant 0 : i32
    return %arg0, %c0_i32, %c0_i32_0 : i32, i32, i32
  }
  func.func @transform_2(%arg0: i32, %arg1: i32, %arg2: i32) -> (i32, i32) {
    %c0_i32 = arith.constant 0 : i32
    %c0_i32_0 = arith.constant 0 : i32
    return %c0_i32, %arg2 : i32, i32
  }
  func.func @transform_3(%arg0: i32, %arg1: i32, %arg2: i32) -> (i32, i32) {
    %c0_i32 = arith.constant 0 : i32
    %c0_i32_0 = arith.constant 0 : i32
    return %c0_i32, %arg2 : i32, i32
  }
  func.func @transform_4(%arg0: i32, %arg1: i32, %arg2: i32) -> (i32, i32) {
    %c0_i32 = arith.constant 0 : i32
    %c0_i32_0 = arith.constant 0 : i32
    %c0_i32_1 = arith.constant 0 : i32
    return %c0_i32, %c0_i32_0 : i32, i32
  }
  func.func @transform_5(%arg0: i32, %arg1: i32, %arg2: i32) -> (i32, i32) {
    %c0_i32 = arith.constant 0 : i32
    %c0_i32_0 = arith.constant 0 : i32
    %c0_i32_1 = arith.constant 0 : i32
    return %c0_i32, %c0_i32_0 : i32, i32
  }
  func.func @transform_6(%arg0: i32, %arg1: i32, %arg2: i32) -> (i32, i32, i32) {
    %c9_i32 = arith.constant 9 : i32
    %0 = arith.cmpi eq, %arg1, %c9_i32 : i32
    %c0_i32 = arith.constant 0 : i32
    %1 = arith.select %0, %arg2, %c0_i32 : i32
    %c0_i32_0 = arith.constant 0 : i32
    %c0_i32_1 = arith.constant 0 : i32
    return %arg0, %c0_i32_0, %1 : i32, i32, i32
  }
  func.func @transform_7(%arg0: i32, %arg1: i32, %arg2: i32) -> (i32, i32, i32) {
    %c0_i32 = arith.constant 0 : i32
    %c0_i32_0 = arith.constant 0 : i32
    %c0_i32_1 = arith.constant 0 : i32
    return %arg0, %c0_i32, %c0_i32_0 : i32, i32, i32
  }
  func.func @transform_8(%arg0: i32, %arg1: i32, %arg2: i32) -> (i32, i32, i32) {
    %c9_i32 = arith.constant 9 : i32
    %0 = arith.cmpi eq, %arg1, %c9_i32 : i32
    %c0_i32 = arith.constant 0 : i32
    %1 = arith.select %0, %arg2, %c0_i32 : i32
    %c0_i32_0 = arith.constant 0 : i32
    %c0_i32_1 = arith.constant 0 : i32
    return %arg0, %c0_i32_0, %1 : i32, i32, i32
  }
}

</mosaic_0001>

<bundles_post_ra>
// kernel: tpu_custom_call.1
= control target key start
LH: loop header
LB: loop body
LE: loop exit
PB: predicated region body
PF: predicated region fallthrough
CT: control target
= control target key end

     0   :  { %s1843_s0 = inlined_call_operand.vmem [shape: f32[2,8,256], index: 0, kind: input, shape index: {}]   ;;  %s1844_s1 = inlined_call_operand.hbm [shape: f32[2,8,16], index: 1, kind: input, shape index: {}]   ;;  %s1845_s2 = inlined_call_operand.hbm [shape: f32[1,256], index: 2, kind: input, shape index: {}]   ;;  %s1846_s3 = inlined_call_operand.hbm [shape: f32[1,256], index: 3, kind: input, shape index: {}]   ;;  %s1847_s4 = inlined_call_operand.vmem [shape: f32[16,1], index: 4, kind: input, shape index: {}]   ;;  %s1848_s5 = inlined_call_operand.vmem [shape: f32[16,1], index: 5, kind: input, shape index: {}]   ;;  %s1849_s6 = inlined_call_operand.hbm [shape: f32[2,16,256], index: 6, kind: output, shape index: {0}]   ;;  %s1850_s7 = inlined_call_operand.hbm [shape: f32[2,8,16], index: 7, kind: output, shape index: {1}]   ;;  %s1851_s8 = inlined_call_operand.hbm [shape: s32[2,1,256], index: 8, kind: output, shape index: {2}]  }
   0x1   :  { %1857 = sst [smem:[#allocation22_spill]] %s1845_s2 }
   0x2   :  { %1858 = sst [smem:[#allocation23_spill]] %s1846_s3 }
   0x3   :  { %1859 = sst [smem:[#allocation24_spill]] %s1851_s8 }
   0x4   :  { %14 = vsyncpa [#allocation5], 0 }
   0x5   :  { %16 = vsyncpa [#allocation5 + $0x1], 0 }
   0x6   :  { %17 = vsyncpa [#allocation8], 0 }
   0x7   :  { %18 = vsyncpa [#allocation6], 0 }
   0x8   :  { %20 = vsyncpa [#allocation6 + $0x1], 0 }
   0x9   :  { %21 = vsyncpa [#allocation12], 0 }
   0xa   :  { %23 = vsyncpa [#allocation12 + $0x1], 0  ;;  %s1580_s27 = smov 0   ;;  %s1582_s28 = smov 0  }
   0xb   :  { %s1584_s29 = smov 0   ;;  %s1586_s30 = smov 0  }
   0xc   :  { %s1588_s9 = smov 0   ;;  %s1590_s10 = smov 0  }
   0xd   :  { %s1592_s11 = smov 0   ;;  %s1594_s12 = smov 0  }
   0xe LB: > { %1860 = sst [smem:[#allocation18_spill]] %s1499_s27  ;;  %s1621_s13 = sadd.s32 4294967295, %s1527_s12   ;;  %s1527_s12 = sphi %s1594_s12, %s29_s12   ;;  %s1523_s11 = sphi %s1592_s11, %s1882_s11   ;;  %s1519_s10 = sphi %s1590_s10, %s1877_s10   ;;  %s1515_s9 = sphi %s1588_s9, %s1881_s9   ;;  %s1511_s30 = sphi %s1586_s30, %s1876_s30   ;;  %s1507_s29 = sphi %s1584_s29, %s1880_s29   ;;  %s1503_s28 = sphi %s1582_s28, %s1879_s28   ;;  %s1499_s27 = sphi %s1580_s27, %s1878_s27  }
   0xf   : > { %1861 = sst [smem:[#allocation19_spill]] %s1519_s10  ;;  %s1852_s14 = sadd.s32 4294967294, %s1527_s12  }
  0x10   : > { %p96_p0 = scmp.ne.s32.totalorder %s1503_s28, %s1499_s27  ;;  %p97_p1 = scmp.eq.s32.totalorder %s1621_s13, 0 }
  0x11   : > { %p226_p2 = scmp.eq.s32.totalorder %s1852_s14, 19  ;;  %p1112_p4 = scmp.ge.s32.totalorder %s1527_s12, 1 }
  0x12   : > { %p1631_p3 = por %p97_p1, %p96_p0  ;;  %p291_p6 = scmp.lt.s32.totalorder %s1527_s12, 21 }
  0x13   : > { %p1636_p5 = por %p226_p2, %p96_p0  ;;  %s1865_s2 = sld [smem:[#allocation22_spill]] }
  0x14   : > { %p1644_p7 = pnand %p1112_p4, %p291_p6  ;;  %s1529_s21 = smov [#allocation7]  }
  0x15   : > { %s1863_s16 = scalar_select %p1636_p5, 1, 0 }
  0x16   : > { %p1161_p8 = pneg %p1644_p7  ;;  %s307_s22 = sshll.u32 %s1529_s21, 4  ;;  %s308_s22 = int_to_ptr.vmem [resolvable:$true] %s307_s22 }
  0x17   : > { %1864 = sst [smem:[#allocation20_spill]] %s1863_s16  ;;  %s1530_s26 = smov [#allocation9]  }
  0x18   : > { %s1867_s3 = sld [smem:[#allocation23_spill]]  ;;  %p1162_p9 = pnand %p1161_p8, %p97_p1 }
  0x19   : > { %s305_s19 = sshll.u32 %s1865_s2, 4  ;;  %s321_s17 = sshll.u32 %s1530_s26, 4  ;;  %s306_s19 = int_to_ptr.hbm [resolvable:$true] %s305_s19  ;;  %s322_s17 = int_to_ptr.vmem [resolvable:$true] %s321_s17 }
  0x1a   : > { %1164 = dma.hbm_to_vmem [thread:$0]  (!%p1162_p9), %s306_s19, 32, %s308_s22, [#allocation8]  }
  0x1b   : > { %p220_p10 = scmp.eq.s32.totalorder %s1621_s13, 19  ;;  %s44_s18 = sadd.s32 1, %s1519_s10 }
  0x1c   : > { %p46_p11 = scmp.ge.s32.totalorder %s44_s18, 10  ;;  %s48_s21 = sadd.s32 1, %s1523_s11 }
  0x1d   : > { %p90_p12 = scmp.ne.s32.totalorder %s1507_s29, %s1503_s28  ;;  %p91_p13 = scmp.eq.s32.totalorder %s1527_s12, 0 }
  0x1e   : > { %s319_s25 = sshll.u32 %s1867_s3, 4  ;;  %s1884_s18 = smov (%p46_p11, %s44_s18), 0  ;;  %s320_s25 = int_to_ptr.hbm [resolvable:$true] %s319_s25 }
  0x1f   : > { %1167 = dma.hbm_to_vmem [thread:$0]  (!%p1162_p9), %s320_s25, 32, %s322_s17, [#allocation8]  }
  0x20   : > { %1868 = sst [smem:[#allocation21_spill]] %s1884_s18  ;;  %s1886_s21 = smov (!%p46_p11, %s48_s21), %s1523_s11 }
  0x21   : > { %s83_s23 = sadd.s32 1, %s1507_s29  ;;  %p1665_p0 = por %p220_p10, %p90_p12 }
  0x22   : > { %p50_p2 = scmp.ge.s32.totalorder %s1886_s21, 2  ;;  %p1669_p4 = por %p91_p13, %p90_p12 }
  0x23   : > { %s351_s22 = sand.u32 1, %s1507_s29   ;;  %s1117_s25 = sshll.u32 %s1523_s11, 3 }
  0x24   : > { %s1888_s21 = smov (%p50_p2, %s1886_s21), 0  ;;  %p1184_p6 = scmp.lt.s32.totalorder %s1527_s12, 20 }
  0x25   : > { %s1116_s26 = sshll.u32 %s351_s22, 3  ;;  %s80_s17 = ssub.s32 %s1523_s11, %s1888_s21 }
  0x26   : > { %p81_p8 = scmp.eq.s32.totalorder %s80_s17, 0  ;;  %s359_s3 = scalar_lea.hbm %s1844_s1, %s1117_s25 }
  0x27   : > { %s361_s18 = sshll.u32 %s359_s3, 4  ;;  %s355_s10 = scalar_lea.vmem [#allocation4], %s1116_s26  ;;  %s362_s18 = int_to_ptr.hbm [resolvable:$true] %s361_s18 }
  0x28   : > { %s363_s16 = sshll.u32 %s355_s10, 4  ;;  %p1169_p9 = pnand %p1184_p6, %p1669_p4  ;;  %s364_s16 = int_to_ptr.vmem [resolvable:$true] %s363_s16 }
  0x29   : > { %s1684_s27 = scalar_select %p81_p8, %s1507_s29, %s83_s23  }
  0x2a   : > { %s352_s8 = scalar_lea.sflag [#allocation5], %s351_s22  ;;  %372 = sbr.rel (%p1644_p7) target bundleno = 675 (0x2a3), region = 44 }
  0x2b   : > { %1171 = dma.hbm_to_vmem [thread:$0]  (!%p1169_p9), %s362_s18, 128, %s364_s16, %s352_s8  }
  0x2c   : > { %s1691_s17 = sand.u32 (!%p1644_p7), 1, %s1503_s28  }
  0x2d   : > { %s1119_s2 = sshll.u32 (!%p1644_p7), %s1691_s17, 3  ;;  %s375_s3 = scalar_lea.sflag (!%p1644_p7), [#allocation5], %s1691_s17 }
  0x2e   : > { %s378_s10 = scalar_lea.vmem (!%p1644_p7), [#allocation4], %s1119_s2 }
  0x2f   : > { %1482 = dma.done.wait (%p1631_p3), %s375_s3, 128  }
  0x30   : > { %1484 = vsyncadd (%p1631_p3), %s375_s3, 4294967168 }
  0x31   : > { %1486 = dma.done.wait (%p97_p1), [#allocation8], 64  }
  0x32   : > { %1488 = vsyncadd (%p97_p1), [#allocation8], 4294967232  ;;  %s1122_s8 = sshll.u32 %s1691_s17, 5  ;;  %s1124_s14 = sshll.u32 %s1691_s17, 1 }
  0x33   : > { %p442_p7 = scmp.lt.s32.totalorder %s1515_s9, 1  ;;  %p459_p10 = scmp.eq.s32.totalorder %s1511_s30, 0 }
  0x34   : > { %s1711_s19 = scalar_lea.vmem [#allocation10], %s1122_s8  ;;  %s1713_s22 = scalar_lea.vmem [#allocation11], %s1119_s2  ;;  %v465_v0 = vld [vmem:[%s378_s10] sm:$0xff] (%p459_p10)  ;;  %vm466_vm0 = vcmask (%p459_p10), 130048  }
  0x35   : > { %s443_s16 = scalar_select %p442_p7, %s1515_s9, 1  ;;  %467 = vst.msk [vmem:[#allocation2] sm:$0xff] (%p459_p10), %vm466_vm0, %v465_v0 }
  0x36   : > { %s1715_s25 = scalar_lea.vmem [#allocation13], %s1124_s14  ;;  %464 = sbr.rel (!%p459_p10) target bundleno = 59 (0x3b), region = 60 }
  0x37   : > { %s1142_s20 = sshll.u32 %s443_s16, 4 }
  0x38   : > { %s449_s23 = scalar_lea.vmem %s1843_s0, %s1142_s20 }
  0x3b PF: > { %v562_v2 = vld [vmem:[%s1847_s4 + $0x8] sm:$0xff]  ;;  %v1531_v3 = vmov 0   ;;  %v1720_v4 = vld [vmem:[%s449_s23] sm:$0xff]  ;;  %vm508_vm1 = vcmask 64512   ;;  %vm471_vm14 = vcmask 130048   ;;  %p1132_p1 = scmp.ne.s32.totalorder %s1511_s30, 9 }
  0x3c   : > { %v475_v1 = vld [vmem:[#allocation2] sm:$0xff]  ;;  %1259 = vset.pattern.permute.xlu1 %v1531_v3  ;;  %1260 = vset.pattern.permute.xlu2 %v1531_v3  ;;  %v1722_v5 = vld [vmem:[%s449_s23 + $0x8] sm:$0xff] }
  0x3d   : > { %476 = vxpose.xlu0.b32.start.end [1/1] (short) (narrow) %v475_v1, 16  ;;  %571 = vperm.xlu1 %1259, %v562_v2   ;;  %v583_v6 = vld [vmem:[%s1848_s5] sm:$0xff]  ;;  %v584_v8 = vld [vmem:[%s1848_s5 + $0x8] sm:$0xff] }
  0x3e   : > { %530 = vmatpush.msra.mxu0 %v1720_v4  ;;  %553 = vmatpush.msra.mxu1 %v1722_v5  ;;  %v561_v7 = vld [vmem:[%s1847_s4] sm:$0xff] }
  0x3f   : > { %593 = vperm.xlu2 %1260, %v584_v8   ;;  %v563_v12 = vld [vmem:[#allocation7] sm:$0x3]  ;;  %v585_v13 = vld [vmem:[#allocation9] sm:$0x3] }
  0x40   : > { %v575_v14 = vperm.slane %v563_v12, 0  ;;  %v597_v15 = vperm.slane %v585_v13, 0  ;;  %v576_v16 = vperm.slane %v563_v12, 1  ;;  %v598_v17 = vperm.slane %v585_v13, 1 }
  0x45   : > { %588 = vperm.xlu1 %1259, %v583_v6  }
  0x99   : > { %v594_v20 = vpop.permute.xlu2 %593 }
  0x9a   : > { %v603_v27 = vsub.f32 %v594_v20, %v597_v15  ;;  %v604_v28 = vsub.f32 %v594_v20, %v598_v17 }
  0x9c   : > { %v611_v35 = vand.u32 2147483647, %v603_v27  ;;  %v612_v36 = vand.u32 2147483647, %v604_v28 }
  0xa4   : > { %1258 = vset.pattern.permute.xlu0 %v1531_v3 }
  0xaf   : > { %v572_v11 = vpop.permute.xlu1 %571 }
  0xb0   : > { %v581_v25 = vsub.f32 %v572_v11, %v575_v14  ;;  %v582_v26 = vsub.f32 %v572_v11, %v576_v16 }
  0xb2   : > { %v607_v33 = vand.u32 2147483647, %v581_v25  ;;  %v608_v34 = vand.u32 2147483647, %v582_v26 }
  0xb3   : > { %566 = vperm.xlu0 %1258, %v561_v7  }
  0xb4   : > { %v615_v41 = vmax.f32 %v607_v33, %v611_v35  ;;  %v616_v42 = vmax.f32 %v608_v34, %v612_v36 }
  0xb6   : > { %vm619_vm4 = vcmp.le.f32.partialorder %v615_v41, 1.0  ;;  %vm620_vm5 = vcmp.le.f32.partialorder %v616_v42, 1.0 }
  0xb7   : > { %v589_v18 = vpop.permute.xlu1 %588 }
  0xb8   : > { %v601_v21 = vsub.f32 %v589_v18, %v597_v15  ;;  %v602_v23 = vsub.f32 %v589_v18, %v598_v17 }
  0xba   : > { %v609_v29 = vand.u32 2147483647, %v601_v21  ;;  %v610_v31 = vand.u32 2147483647, %v602_v23 }
  0xe1   : > { %v492_v9 = vpop.trf.xlu0 }
  0xe2   : > { %1128 = vmatmul.msk.f32.vlgmr.msra.gmra.mxu0 %vm508_vm1, %v492_v9  ;;  %1130 = vmatmul.msk.f32.vlgmr.msra.gmra.mxu1 %vm508_vm1, %v492_v9 }
  0xe9   : > { %v493_v10 = vpop.trf.xlu0 }
  0xea   : > { %1129 = vmatmul.msk.f32.gmra.mxu0 %vm508_vm1, %v493_v10  ;;  %1131 = vmatmul.msk.f32.gmra.mxu1 %vm508_vm1, %v493_v10 }
 0x125   : > { %v567_v19 = vpop.permute.xlu0 %566 }
 0x126   : > { %v579_v22 = vsub.f32 %v567_v19, %v575_v14  ;;  %v580_v24 = vsub.f32 %v567_v19, %v576_v16 }
 0x128   : > { %v605_v30 = vand.u32 2147483647, %v579_v22  ;;  %v606_v32 = vand.u32 2147483647, %v580_v24 }
 0x12a   : > { %v613_v39 = vmax.f32 %v605_v30, %v609_v29  ;;  %v614_v40 = vmax.f32 %v606_v32, %v610_v31 }
 0x12c   : > { %vm617_vm2 = vcmp.le.f32.partialorder %v613_v39, 1.0  ;;  %vm618_vm3 = vcmp.le.f32.partialorder %v614_v40, 1.0 }
 0x15f   : > { %v532_v37 = vpop.f32.mrf.mxu0  ;;  %v555_v38 = vpop.f32.mrf.mxu1 }
 0x160   : > { %v621_v43 = vsel %vm617_vm2, %v532_v37, -1e+30  ;;  %v622_v46 = vsel %vm618_vm3, %v555_v38, -1e+30 }
 0x167   : > { %v535_v44 = vpop.f32.mrf.mxu0  ;;  %v558_v45 = vpop.f32.mrf.mxu1 }
 0x168   : > { %v623_v47 = vsel %vm619_vm4, %v535_v44, -1e+30  ;;  %v624_v48 = vsel %vm620_vm5, %v558_v45, -1e+30 }
 0x169   : > { %v625_v49 = vmax.f32 %v621_v43, %v623_v47  ;;  %v632_v50 = vmax.f32 %v622_v46, %v624_v48 }
 0x16b   : > { %v626_v51 = vrot.slane %v625_v49, 4  ;;  %v633_v52 = vrot.slane %v632_v50, 4 }
 0x16d   : > { %v627_v53 = vmax.f32 %v625_v49, %v626_v51  ;;  %v634_v54 = vmax.f32 %v632_v50, %v633_v52  ;;  %v1532_v51 = vmov 0.0  }
 0x16e   : > { %472 = vst.msk [vmem:[#allocation3] sm:$0xff] %vm471_vm14, %v1532_v51 }
 0x16f   : > { %v628_v55 = vrot.slane %v627_v53, 2  ;;  %v635_v56 = vrot.slane %v634_v54, 2 }
 0x171   : > { %v629_v57 = vmax.f32 %v627_v53, %v628_v55  ;;  %v636_v58 = vmax.f32 %v634_v54, %v635_v56 }
 0x173   : > { %v630_v59 = vrot.slane %v629_v57, 1  ;;  %v637_v60 = vrot.slane %v636_v58, 1 }
 0x175   : > { %v631_v61 = vmax.f32 %v629_v57, %v630_v59  ;;  %v638_v62 = vmax.f32 %v636_v58, %v637_v60  ;;  %v699_v53 = vld [vmem:[#allocation3] sm:$0xff] }
 0x177   : > { %v639_v63 = vsub.f32 %v621_v43, %v631_v61  ;;  %v641_v0 = vsub.f32 %v623_v47, %v631_v61  ;;  %v640_v1 = vsub.f32 %v622_v46, %v638_v62  ;;  %v642_v2 = vsub.f32 %v624_v48, %v638_v62 }
 0x179   : > { %v643_v3 = vmul.f32 1.442695, %v639_v63  ;;  %v647_v6 = vmul.f32 1.442695, %v641_v0  ;;  %v645_v7 = vmul.f32 1.442695, %v640_v1 }
 0x17a   : > { %v649_v8 = vmul.f32 1.442695, %v642_v2 }
 0x17b   : > { %1261 = vpow2.f32 %v643_v3 }
 0x17c   : > { %1263 = vpow2.f32 %v647_v6 }
 0x17d   : > { %1265 = vpow2.f32 %v645_v7 }
 0x17e   : > { %1267 = vpow2.f32 %v649_v8 }
 0x181   : > { %v1262_v9 = vpop.eup %1261 }
 0x182   : > { %v1264_v10 = vpop.eup %1263 }
 0x183   : > { %v1266_v11 = vpop.eup %1265  ;;  %v651_v12 = vadd.f32 %v1264_v10, %v1262_v9 }
 0x184   : > { %v1268_v13 = vpop.eup %1267 }
 0x185   : > { %v652_v14 = vrot.slane %v651_v12, 4  ;;  %v658_v15 = vadd.f32 %v1268_v13, %v1266_v11 }
 0x187   : > { %v653_v16 = vadd.f32 %v652_v14, %v651_v12  ;;  %v659_v17 = vrot.slane %v658_v15, 4 }
 0x189   : > { %v654_v18 = vrot.slane %v653_v16, 2  ;;  %v660_v19 = vadd.f32 %v659_v17, %v658_v15 }
 0x18b   : > { %v655_v20 = vadd.f32 %v654_v18, %v653_v16  ;;  %v661_v21 = vrot.slane %v660_v19, 2 }
 0x18d   : > { %v656_v22 = vrot.slane %v655_v20, 1  ;;  %v662_v23 = vadd.f32 %v661_v21, %v660_v19 }
 0x18f   : > { %v657_v24 = vadd.f32 %v656_v22, %v655_v20  ;;  %v663_v25 = vrot.slane %v662_v23, 1 }
 0x191   : > { %1269 = vrcp.f32 %v657_v24  ;;  %v664_v26 = vadd.f32 %v663_v25, %v662_v23  ;;  %v676_v32 = vand.u32 2147483648, %v657_v24  ;;  %v674_v34 = vand.u32 2147483647, %v657_v24 }
 0x192   : > { %vm670_vm7 = vweird.f32 %v657_v24 }
 0x193   : > { %1271 = vrcp.f32 %v664_v26  ;;  %v691_v36 = vand.u32 2147483648, %v664_v26  ;;  %v689_v39 = vand.u32 2147483647, %v664_v26  ;;  %v677_v40 = vor.u32 1.1754944e-38, %v676_v32 }
 0x194   : > { %vm675_vm10 = vcmp.eq.f32.partialorder %v674_v34, 8.507059e+37  ;;  %vm685_vm11 = vweird.f32 %v664_v26 }
 0x195   : > { %v692_v44 = vor.u32 1.1754944e-38, %v691_v36  ;;  %vm690_vm13 = vcmp.eq.f32.partialorder %v689_v39, 8.507059e+37 }
 0x197   : > { %v1270_v27 = vpop.eup %1269 }
 0x198   : > { %v666_v28 = vmul.f32 %v1270_v27, %v657_v24  ;;  %vm671_vm6 = vweird.f32 %v1270_v27 }
 0x199   : > { %v1272_v29 = vpop.eup %1271  ;;  %vm672_vm9 = vmor %vm670_vm7, %vm671_vm6 }
 0x19a   : > { %v667_v30 = vsub.f32 1.0, %v666_v28  ;;  %v681_v31 = vmul.f32 %v1272_v29, %v664_v26  ;;  %vm686_vm8 = vweird.f32 %v1272_v29 }
 0x19b   : > { %vm687_vm12 = vmor %vm685_vm11, %vm686_vm8 }
 0x19c   : > { %v668_v33 = vmul.f32 %v1270_v27, %v667_v30  ;;  %v682_v35 = vsub.f32 1.0, %v681_v31 }
 0x19e   : > { %v669_v37 = vadd.f32 %v1270_v27, %v668_v33  ;;  %v683_v38 = vmul.f32 %v1272_v29, %v682_v35 }
 0x1a0   : > { %v673_v41 = vsel %vm672_vm9, %v1270_v27, %v669_v37  ;;  %v684_v42 = vadd.f32 %v1272_v29, %v683_v38 }
 0x1a1   : > { %v678_v43 = vsel %vm675_vm10, %v677_v40, %v673_v41 }
 0x1a2   : > { %v697_v45 = vmul.f32 %v1264_v10, %v678_v43  ;;  %v688_v46 = vsel %vm687_vm12, %v1272_v29, %v684_v42  ;;  %v695_v49 = vmul.f32 %v1262_v9, %v678_v43 }
 0x1a3   : > { %v693_v47 = vsel %vm690_vm13, %v692_v44, %v688_v46 }
 0x1a4   : > { %714 = vmatpush.xpose.msra.mxu2 %v697_v45  ;;  %v698_v48 = vmul.f32 %v1268_v13, %v693_v47  ;;  %v696_v50 = vmul.f32 %v1266_v11, %v693_v47 }
 0x1a6   : > { %734 = vmatpush.xpose.msra.mxu3 %v698_v48 }
 0x1a8   : > { %715 = vmatpush.xpose.msra.mxu2 %v695_v49 }
 0x1aa   : > { %735 = vmatpush.xpose.msra.mxu3 %v696_v50 }
 0x1ab   : > { %716 = vmatmul.f32.vlgmr.msra.gmra.mxu2 %v1720_v4 }
 0x1ad   : > { %736 = vmatmul.f32.vlgmr.msra.gmra.mxu3 %v1722_v5 }
 0x22e   : > { %v717_v52 = vpop.f32.mrf.mxu2 }
 0x230   : > { %v737_v54 = vpop.f32.mrf.mxu3 }
 0x231   : > { %v738_v55 = vadd.f32 %v737_v54, %v717_v52  ;;  %746 = sbr.rel (%p1132_p1) target bundleno = 600 (0x258), region = 68 }
 0x233   : > { %v740_v56 = vadd.f32 %v738_v55, %v699_v53 }
 0x235   : > { %742 = vst.msk [vmem:[#allocation3] sm:$0xff] %vm471_vm14, %v740_v56 }
 0x236   : > { %747 = vst [vmem:[%s1711_s19] sm:$0xff] %v695_v49  ;;  %v754_v4 = vmax.f32 %v695_v49, %v697_v45  ;;  %v761_v5 = vmax.f32 %v696_v50, %v698_v48  ;;  %v751_v59 = vlaneseq  ;;  %vm799_vm11 = vcmask 1040384  }
 0x237   : > { %748 = vst [vmem:[%s1711_s19 + $0x8] sm:$0xff] %v696_v50 }
 0x238   : > { %749 = vst [vmem:[%s1711_s19 + $0x10] sm:$0xff] %v697_v45  ;;  %v755_v57 = vrot.slane %v754_v4, 4  ;;  %v762_v58 = vrot.slane %v761_v5, 4  ;;  %v752_v0 = vshrl.u32 %v751_v59, 7  ;;  %vm803_vm12 = vcmp.lt.s32.totalorder %v751_v59, 256 }
 0x239   : > { %750 = vst [vmem:[%s1711_s19 + $0x18] sm:$0xff] %v698_v48 }
 0x23a   : > { %v756_v60 = vmax.f32 %v754_v4, %v755_v57  ;;  %v763_v61 = vmax.f32 %v761_v5, %v762_v58  ;;  %v753_v7 = vadd.s32 8, %v752_v0 }
 0x23c   : > { %v757_v62 = vrot.slane %v756_v60, 2  ;;  %v764_v63 = vrot.slane %v763_v61, 2 }
 0x23e   : > { %v758_v1 = vmax.f32 %v756_v60, %v757_v62  ;;  %v765_v2 = vmax.f32 %v763_v61, %v764_v63 }
 0x240   : > { %v759_v3 = vrot.slane %v758_v1, 1  ;;  %v766_v6 = vrot.slane %v765_v2, 1 }
 0x242   : > { %v760_v8 = vmax.f32 %v758_v1, %v759_v3  ;;  %v767_v9 = vmax.f32 %v765_v2, %v766_v6 }
 0x244   : > { %vm768_vm15 = vcmp.eq.f32.partialorder %v695_v49, %v760_v8  ;;  %vm769_vm0 = vcmp.eq.f32.partialorder %v696_v50, %v767_v9  ;;  %vm770_vm1 = vcmp.eq.f32.partialorder %v697_v45, %v760_v8  ;;  %vm771_vm2 = vcmp.eq.f32.partialorder %v698_v48, %v767_v9 }
 0x245   : > { %v772_v10 = vsel %vm768_vm15, %v752_v0, 16  ;;  %v773_v11 = vsel %vm769_vm0, %v752_v0, 16  ;;  %v774_v12 = vsel %vm770_vm1, %v753_v7, 16  ;;  %v775_v13 = vsel %vm771_vm2, %v753_v7, 16 }
 0x246   : > { %vm776_vm3 = vcmp.lt.s32.totalorder %v772_v10, %v774_v12  ;;  %vm787_vm4 = vcmp.lt.s32.totalorder %v773_v11, %v775_v13 }
 0x247   : > { %v777_v14 = vsel %vm776_vm3, %v772_v10, %v774_v12  ;;  %v788_v15 = vsel %vm787_vm4, %v773_v11, %v775_v13 }
 0x248   : > { %v778_v16 = vrot.slane %v777_v14, 4  ;;  %v789_v17 = vrot.slane %v788_v15, 4 }
 0x24a   : > { %vm779_vm5 = vcmp.lt.s32.totalorder %v777_v14, %v778_v16  ;;  %vm790_vm6 = vcmp.lt.s32.totalorder %v788_v15, %v789_v17 }
 0x24b   : > { %v780_v18 = vsel %vm779_vm5, %v777_v14, %v778_v16  ;;  %v791_v19 = vsel %vm790_vm6, %v788_v15, %v789_v17 }
 0x24c   : > { %v781_v20 = vrot.slane %v780_v18, 2  ;;  %v792_v21 = vrot.slane %v791_v19, 2 }
 0x24e   : > { %vm782_vm7 = vcmp.lt.s32.totalorder %v780_v18, %v781_v20  ;;  %vm793_vm8 = vcmp.lt.s32.totalorder %v791_v19, %v792_v21 }
 0x24f   : > { %v783_v22 = vsel %vm782_vm7, %v780_v18, %v781_v20  ;;  %v794_v23 = vsel %vm793_vm8, %v791_v19, %v792_v21 }
 0x250   : > { %v784_v24 = vrot.slane %v783_v22, 1  ;;  %v795_v25 = vrot.slane %v794_v23, 1 }
 0x252   : > { %vm785_vm9 = vcmp.lt.s32.totalorder %v783_v22, %v784_v24  ;;  %vm796_vm10 = vcmp.lt.s32.totalorder %v794_v23, %v795_v25 }
 0x253   : > { %v786_v26 = vsel %vm785_vm9, %v783_v22, %v784_v24  ;;  %v797_v27 = vsel %vm796_vm10, %v794_v23, %v795_v25 }
 0x254   : > { %v798_v28 = vrot.slane %v797_v27, 7 }
 0x256   : > { %v800_v29 = vsel %vm799_vm11, %v786_v26, %v798_v28 }
 0x257   : > { %805 = vst.msk [vmem:[%s1715_s25] sm:$0x3] %vm803_vm12, %v800_v29 }
 0x258 PF: > { %v810_v30 = vlaneseq  ;;  %s1144_s30 = sshll.u32 %s1515_s9, 5  ;;  %s879_s26 = sshll.u32 %s1711_s19, 4  ;;  %s880_s26 = int_to_ptr.vmem [resolvable:$true] %s879_s26 }
 0x259   : > { %s878_s23 = scalar_lea.hbm %s1849_s6, %s1144_s30  ;;  %s853_s2 = scalar_lea.sflag [#allocation6], %s1691_s17 }
 0x25a   : > { %v1745_v32 = vshrl.u32 %v810_v30, 7  ;;  %s881_s3 = sshll.u32 %s878_s23, 4  ;;  %s1385_s20 = scalar_lea.hbm %s1849_s6, 64  ;;  %s882_s3 = int_to_ptr.hbm [resolvable:$true] %s881_s3 }
 0x25b   : > { %s1379_s10 = sshra.s32 %s882_s3, 4  ;;  %s1380_s10 = int_to_ptr.hbm [resolvable:$true] %s1379_s10 }
 0x25c   : > { %vm812_vm13 = vcmp.eq.s32.totalorder %v1745_v32, 4  ;;  %s1381_s8 = scalar_lea.hbm %s1380_s10, 32  ;;  %p1386_p13 = scmp.lt.s32.totalorder %s1380_s10, %s1849_s6 }
 0x25d   : > { %p1382_p3 = scmp.ne.s32.totalorder %s1380_s10, %s1381_s8  ;;  %p1387_p2 = scmp.lt.s32.totalorder %s1385_s20, %s1381_s8 }
 0x25e   : > { %v809_v31 = vld [vmem:[#allocation3] sm:$0xff] }
 0x25f   : > { %v813_v33 = vsel %vm812_vm13, %v809_v31, 0.0  ;;  %p1383_p11 = pnand %p1382_p3, %p1665_p0  ;;  %p1388_p4 = por %p1387_p2, %p1386_p13 }
 0x260   : > { %v814_v34 = vsel %vm471_vm14, %v813_v33, 0.0 }
 0x261   : > { %v815_v35 = vrot.slane %v814_v34, 4  ;;  %p1384_p12 = pneg %p1383_p11 }
 0x263   : > { %v816_v36 = vadd.f32 %v815_v35, %v814_v34  ;;  %p1389_p6 = pnand %p1388_p4, %p1384_p12 }
 0x265   : > { %1392 = shalt.err (!%p1389_p6)
}
 0x266   : > { %s1533_s17 = smov 256   ;;  %s1534_s18 = smov 16   ;;  %v817_v37 = vrot.slane %v816_v36, 2 }
 0x267   : > { %1155 = dma.vmem_to_hbm [thread:$0]  (%p1665_p0), %s880_s26, 512, %s882_s3, %s853_s2, %s1533_s17, %s1533_s17, %s1534_s18  }
 0x268   : > { %v818_v38 = vadd.f32 %v817_v37, %v816_v36  ;;  %s1138_s15 = sshll.u32 %s1515_s9, 3  ;;  %s1139_s23 = sshll.u32 %s1515_s9, 1 }
 0x269   : > { %s894_s2 = scalar_lea.hbm %s1850_s7, %s1138_s15  ;;  %s1871_s14 = sld [smem:[#allocation24_spill]] }
 0x26a   : > { %v819_v39 = vrot.slane %v818_v38, 1  ;;  %s857_s20 = sand.u32 1, %s1621_s13   ;;  %s896_s19 = sshll.u32 %s1713_s22, 4  ;;  %s897_s19 = int_to_ptr.vmem [resolvable:$true] %s896_s19 }
 0x26b   : > { %s898_s30 = sshll.u32 %s894_s2, 4  ;;  %s914_s17 = sshll.u32 %s1715_s25, 4  ;;  %s899_s30 = int_to_ptr.hbm [resolvable:$true] %s898_s30  ;;  %s1778_s17 = int_to_ptr.vmem [resolvable:$true] %s914_s17 }
 0x26c   : > { %v820_v40 = vadd.f32 %v819_v39, %v818_v38  ;;  %s858_s13 = scalar_lea.sflag [#allocation12], %s857_s20  ;;  %s1407_s18 = sshra.s32 %s899_s30, 4  ;;  %s1408_s18 = int_to_ptr.hbm [resolvable:$true] %s1407_s18 }
 0x26d   : > { %s1409_s25 = scalar_lea.hbm %s1408_s18, 8  ;;  %s1413_s26 = scalar_lea.hbm %s1850_s7, 16 }
 0x26e   : > { %v821_v41 = vadd.f32 1e-16, %v820_v40  ;;  %p1410_p8 = scmp.ne.s32.totalorder %s1408_s18, %s1409_s25  ;;  %p1414_p10 = scmp.lt.s32.totalorder %s1408_s18, %s1850_s7 }
 0x26f   : > { %s912_s16 = scalar_lea.hbm %s1871_s14, %s1139_s23  ;;  %p1415_p1 = scmp.lt.s32.totalorder %s1413_s26, %s1409_s25 }
 0x270   : > { %1273 = vrcp.f32 %v821_v41  ;;  %v833_v44 = vand.u32 2147483648, %v821_v41  ;;  %vm827_vm15 = vweird.f32 %v821_v41  ;;  %v831_v46 = vand.u32 2147483647, %v821_v41  ;;  %s916_s9 = sshll.u32 %s912_s16, 4  ;;  %p1411_p9 = pnand %p1410_p8, %p1665_p0  ;;  %s1780_s9 = int_to_ptr.hbm [resolvable:$true] %s916_s9 }
 0x271   : > { %p1416_p3 = por %p1415_p1, %p1414_p10 }
 0x272   : > { %v834_v48 = vor.u32 1.1754944e-38, %v833_v44  ;;  %vm832_vm2 = vcmp.eq.f32.partialorder %v831_v46, 8.507059e+37  ;;  %p1412_p7 = pneg %p1411_p9 }
 0x274   : > { %p1417_p11 = pnand %p1416_p3, %p1412_p7 }
 0x276   : > { %v1274_v42 = vpop.eup %1273 }
 0x277   : > { %v823_v43 = vmul.f32 %v1274_v42, %v821_v41  ;;  %vm828_vm0 = vweird.f32 %v1274_v42 }
 0x278   : > { %vm829_vm1 = vmor %vm827_vm15, %vm828_vm0 }
 0x279   : > { %v824_v45 = vsub.f32 1.0, %v823_v43 }
 0x27b   : > { %v825_v47 = vmul.f32 %v1274_v42, %v824_v45 }
 0x27d   : > { %v826_v49 = vadd.f32 %v1274_v42, %v825_v47 }
 0x27f   : > { %v830_v50 = vsel %vm829_vm1, %v1274_v42, %v826_v49 }
 0x280   : > { %v835_v51 = vsel %vm832_vm2, %v834_v48, %v830_v50 }
 0x281   : > { %v837_v52 = vmul.f32 %v835_v51, %v809_v31 }
 0x283   : > { %838 = vst.msk [vmem:[%s1713_s22] sm:$0xff] %vm471_vm14, %v837_v52  ;;  %v839_v53 = vsel %vm812_vm13, 0.0, %v837_v52 }
 0x284   : > { %v840_v54 = vmul.f32 %v839_v53, %v839_v53 }
 0x285   : > { %1420 = shalt.err (!%p1417_p11)
}
 0x286   : > { %1156 = dma.vmem_to_hbm [thread:$0]  (%p1665_p0), %s897_s19, 128, %s899_s30, %s858_s13  }
 0x287   : > { %s1435_s22 = sshra.s32 %s1780_s9, 4  ;;  %s1441_s20 = scalar_lea.hbm %s1871_s14, 4  ;;  %s1436_s22 = int_to_ptr.hbm [resolvable:$true] %s1435_s22 }
 0x288   : > { %s1437_s10 = scalar_lea.hbm %s1436_s22, 2  ;;  %p1442_p4 = scmp.lt.s32.totalorder %s1436_s22, %s1871_s14 }
 0x289   : > { %p1438_p12 = scmp.ne.s32.totalorder %s1436_s22, %s1437_s10  ;;  %p1443_p6 = scmp.lt.s32.totalorder %s1441_s20, %s1437_s10 }
 0x28b   : > { %p1439_p13 = pnand %p1438_p12, %p1665_p0  ;;  %p1444_p8 = por %p1443_p6, %p1442_p4 }
 0x28d   : > { %p1440_p2 = pneg %p1439_p13 }
 0x28f   : > { %p1445_p9 = pnand %p1444_p8, %p1440_p2 }
 0x291   : > { %1448 = shalt.err (!%p1445_p9)
}
 0x292   : > { %1157 = dma.vmem_to_hbm [thread:$0]  (%p1665_p0), %s1778_s17, 32, %s1780_s9, %s858_s13   ;;  %v841_v55 = vsel %vm471_vm14, %v840_v54, 0.0  ;;  %v849_v60 = vmul.f32 2.0, %v839_v53 }
 0x293   : > { %v842_v56 = vrot.slane %v841_v55, 4 }
 0x295   : > { %v843_v4 = vadd.f32 %v842_v56, %v841_v55 }
 0x297   : > { %v844_v5 = vrot.slane %v843_v4, 2 }
 0x299   : > { %v845_v57 = vadd.f32 %v844_v5, %v843_v4 }
 0x29b   : > { %v846_v58 = vrot.slane %v845_v57, 1 }
 0x29d   : > { %v847_v59 = vadd.f32 %v846_v58, %v845_v57 }
 0x29f   : > { %v848_v61 = vsub.f32 0.0, %v847_v59 }
 0x2a1   : > { %v850_v62 = vsel %vm812_vm13, %v848_v61, %v849_v60 }
 0x2a2   : > { %851 = vst.msk [vmem:[#allocation2] sm:$0xff] %vm471_vm14, %v850_v62 }
 0x2a3 PF: > { %s1872_s24 = sld [smem:[#allocation18_spill]]  ;;  %p1187_p0 = scmp.ge.s32.totalorder %s1527_s12, 2 }
 0x2a5   : > { %p1173_p7 = pnand %p1187_p0, %p1636_p5 }
 0x2a7   : > { %p1174_p10 = pneg %p1173_p7 }
 0x2a9   : > { %s928_s30 = sand.u32 1, %s1872_s24  }
 0x2aa   : > { %s929_s17 = scalar_lea.sflag [#allocation6], %s928_s30 }
 0x2ab   : > { %1490 = dma.done.wait (%p1174_p10), %s929_s17, 512  }
 0x2ac   : > { %1492 = vsyncadd (%p1174_p10), %s929_s17, 4294966784  ;;  %s1874_s9 = sadd.s32 4294967294, %s1527_s12  }
 0x2ad   : > { %s938_s13 = sand.u32 1, %s1874_s9  }
 0x2ae   : > { %s939_s15 = scalar_lea.sflag [#allocation12], %s938_s13 }
 0x2af   : > { %1494 = dma.done.wait (%p1174_p10), %s939_s15, 160  }
 0x2b0   : > { %1496 = vsyncadd (%p1174_p10), %s939_s15, 4294967136  ;;  %s29_s12 = sadd.s32 1, %s1527_s12   ;;  %s1875_s23 = smov %s1684_s27 }
 0x2b1   : > { %p26_p1 = scmp.ge.s32.totalorder %s29_s12, 22   ;;  %s1876_s30 = sld [smem:[#allocation19_spill]] }
 0x2b2   : > { %s1877_s10 = sld [smem:[#allocation21_spill]]  ;;  %s1878_s27 = smov %s1503_s28 }
 0x2b3   : > { %s1879_s28 = smov %s1507_s29  ;;  %s1880_s29 = smov %s1875_s23 }
 0x2b4   : > { %s1881_s9 = smov %s1523_s11  ;;  %s1882_s11 = smov %s1888_s21 }
 0x2b5   :  { %28 = sbr.rel (!%p26_p1) target bundleno = 14 (0xe), region = 150 }
 0x2ba   :  { %955 = vsyncpa [#allocation5], 1 }
 0x2bb   :  { %957 = vsyncpa [#allocation5 + $0x1], 1 }
 0x2bc   :  { %958 = vsyncpa [#allocation8], 1 }
 0x2bd   :  { %959 = vsyncpa [#allocation6], 1 }
 0x2be   :  { %961 = vsyncpa [#allocation6 + $0x1], 1 }
 0x2bf   :  { %962 = vsyncpa [#allocation12], 1 }
 0x2c0   :  { %964 = vsyncpa [#allocation12 + $0x1], 1 }

</bundles_post_ra>
